<compile_context>
chip_gen: v5e
topology: v5e:2x2
jax: 0.10.0
libtpu: 0.0.40
codegen_flags: <defaults>
</compile_context>

<pallas_src>
import jax
import jax.numpy as jnp
from jax import lax
from jax.experimental import pallas as pl
from jax.experimental.pallas import tpu as pltpu

FINAL_FEATURE_DIM = 40      # final_feature_dim = 40 * 1
EMBEDDING_SIZE = 3          # embedding_size = 3
_LANE = 128                 # TPU lane width


def _cdiv(a, b):
    return (a + b - 1) // b


def _tl_head_kernel(x_ref, w_ref, b_ref, oT_ref):
    """Fused Linear(40->3) + per-sample L2 normalize.

    x_ref:  (TB, F)  backbone features, native row-major layout (contiguous DMA)
    w_ref:  (E, F)   linear weight (torch nn.Linear layout), same dtype as x
    b_ref:  (E, 1)   linear bias, float32
    oT_ref: (E, TB)  normalized embeddings, feature-major (lane axis = batch)
    """
    x = x_ref[...]            # bf16 goes straight to the MXU (no f32 upcast copy)
    w = w_ref[...]

    # y^T = W @ x^T -> (E, TB): contract the feature axis of BOTH operands
    # ('ef,bf->eb', same contraction structure as flash-attention's qk), so the
    # MXU result already has the batch on the 128-lane axis. The epilogue and
    # the store then touch only TB/128 lane-dense vregs; no transpose needed.
    yt = lax.dot_general(
        w, x,
        dimension_numbers=(((1,), (1,)), ((), ())),
        preferred_element_type=jnp.float32,
    )                                                 # (E, TB) float32
    yt = yt + b_ref[...].astype(jnp.float32)          # bias broadcast along lanes

    # Per-sample (per-column) L2 norm; zero-norm columns -> zeros.
    # rsqrt (EUP slot) + multiply instead of sqrt + divide.
    sq = jnp.sum(yt * yt, axis=0, keepdims=True)      # (1, TB)
    is_zero = sq == 0.0
    inv = lax.rsqrt(jnp.where(is_zero, 1.0, sq))
    oT_ref[...] = jnp.where(is_zero, 0.0, yt * inv)


def tl_model_forward(x_feats, w, b, *, tile_b=16384):
    """Run the TLModel head on backbone features.

    x_feats: (B, 40) features from the frozen backbone (float32 or bfloat16)
    w:       (3, 40) linear weight (torch nn.Linear layout)
    b:       (3,)    linear bias
    returns: (B, 3)  float32 L2-normalized embeddings
    """
    B, F = x_feats.shape
    E, F2 = w.shape
    assert F == FINAL_FEATURE_DIM and F2 == F and E == EMBEDDING_SIZE
    assert tile_b >= _LANE and tile_b % _LANE == 0, "tile_b must be a multiple of 128"

    # Tile selection: pad the batch only to a multiple of 128 lanes (never to a
    # multiple of a huge tile), pick the tile so it divides the padded batch,
    # and ensure >=2 tiles whenever possible so both v7x TensorCores get work.
    groups = max(_cdiv(B, _LANE), 1)                  # number of 128-row groups
    max_groups_per_tile = max(tile_b // _LANE, 1)
    n_tiles = _cdiv(groups, max_groups_per_tile)
    if groups >= 2:
        n_tiles = max(n_tiles, 2)
    groups_per_tile = _cdiv(groups, n_tiles)
    tile = groups_per_tile * _LANE
    b_pad = n_tiles * tile                            # <= round_up(B,128) + (n_tiles-1)*128

    if b_pad != B:
        x_feats = jnp.pad(x_feats, ((0, b_pad - B), (0, 0)))

    w_in = w.astype(x_feats.dtype)                    # tiny; bf16 feeds the MXU directly
    b2d = b.reshape(E, 1).astype(jnp.float32)

    out_t = pl.pallas_call(
        _tl_head_kernel,
        out_shape=jax.ShapeDtypeStruct((E, b_pad), jnp.float32),
        grid_spec=pltpu.PrefetchScalarGridSpec(
            num_scalar_prefetch=0,
            grid=(n_tiles,),
            in_specs=[
                pl.BlockSpec((tile, F), lambda i: (i, 0)),   # contiguous feature tile
                pl.BlockSpec((E, F), lambda i: (0, 0)),      # weight (whole)
                pl.BlockSpec((E, 1), lambda i: (0, 0)),      # bias (whole)
            ],
            out_specs=pl.BlockSpec((E, tile), lambda i: (0, i)),
        ),
        compiler_params=pltpu.CompilerParams(
            dimension_semantics=("parallel",),        # batch tiles shard across TCs
            vmem_limit_bytes=48 * 1024 * 1024,        # headroom for 16K-row tiles on all gens
        ),
    )(x_feats, w_in, b2d)

    # (3, b_pad) -> (B, 3). Output is only ~7.5% of the HBM traffic; a consumer
    # that accepts feature-major (3, B) embeddings could skip this entirely.
    return out_t[:, :B].T


def reference_forward(x_feats, w, b):
    """Pure-JAX reference matching the torch forward semantics."""
    y = x_feats.astype(jnp.float32) @ w.astype(jnp.float32).T + b.astype(jnp.float32)
    norm = jnp.linalg.norm(y, axis=-1, keepdims=True)
    return jnp.where(norm == 0.0, 0.0, y / jnp.where(norm == 0.0, 1.0, norm))


if __name__ == "__main__":
    key = jax.random.PRNGKey(0)
    k_x, k_w, k_b = jax.random.split(key, 3)

    # Deliberately NOT a multiple of 128 to exercise the padded-tail path.
    batch = 200

    x_feats = jax.random.normal(k_x, (batch, FINAL_FEATURE_DIM), dtype=jnp.float32)
    w = (jax.random.normal(k_w, (EMBEDDING_SIZE, FINAL_FEATURE_DIM), dtype=jnp.float32)
         * (1.0 / jnp.sqrt(FINAL_FEATURE_DIM)))
    b = jax.random.normal(k_b, (EMBEDDING_SIZE,), dtype=jnp.float32) * 0.01

    # float32 feature path
    out = jax.block_until_ready(tl_model_forward(x_feats, w, b))
    ref = reference_forward(x_feats, w, b)
    assert out.shape == (batch, EMBEDDING_SIZE)
    assert jnp.allclose(out, ref, atol=5e-3, rtol=5e-3), "mismatch vs reference (f32)"
    norms = jnp.linalg.norm(out, axis=-1)
    assert bool(jnp.all((jnp.abs(norms - 1.0) < 1e-3) | (norms == 0.0)))

    # bfloat16 feature path: bf16 feeds the MXU directly (f32 accumulate), so
    # tolerances are at bf16-product precision.
    x_bf16 = x_feats.astype(jnp.bfloat16)
    out_bf = jax.block_until_ready(tl_model_forward(x_bf16, w, b))
    ref_bf = reference_forward(x_bf16.astype(jnp.float32), w, b)
    assert out_bf.shape == (batch, EMBEDDING_SIZE)
    assert jnp.allclose(out_bf, ref_bf, atol=2e-2, rtol=2e-2), "mismatch vs reference (bf16)"

    print("KERNEL_OK")
</pallas_src>

<mosaic_0001>
module attributes {stable_mosaic.version = 11 : i64} {
  func.func @_tl_head_kernel(%arg0: i32, %arg1: memref<128x40xf32, #tpu.memory_space<vmem>>, %arg2: memref<3x40xf32, #tpu.memory_space<vmem>>, %arg3: memref<3x1xf32, #tpu.memory_space<vmem>>, %arg4: memref<3x128xf32, #tpu.memory_space<vmem>>) attributes {dimension_semantics = [#tpu.dimension_semantics<parallel>], iteration_bounds = array<i64: 2>, scalar_prefetch = 0 : i64, scratch_operands = 0 : i64, tpu.core_type = #tpu.core_type<tc>, window_params = [{transform_indices = @transform_0, window_bounds = array<i64: 128, 40>}, {pipeline_mode = #tpu.pipeline_mode<synchronous>, transform_indices = @transform_1, window_bounds = array<i64: 3, 40>}, {pipeline_mode = #tpu.pipeline_mode<synchronous>, transform_indices = @transform_2, window_bounds = array<i64: 3, 1>}, {transform_indices = @transform_3, window_bounds = array<i64: 3, 128>}]} {
    %c0 = arith.constant 0 : index
    %c0_0 = arith.constant 0 : index
    %0 = vector.load %arg1[%c0, %c0_0] : memref<128x40xf32, #tpu.memory_space<vmem>>, vector<128x40xf32>
    %c0_1 = arith.constant 0 : index
    %c0_2 = arith.constant 0 : index
    %1 = vector.load %arg2[%c0_1, %c0_2] : memref<3x40xf32, #tpu.memory_space<vmem>>, vector<3x40xf32>
    %cst = arith.constant dense<0.000000e+00> : vector<3x128xf32>
    %2 = tpu.matmul %1, %0, %cst {dimension_numbers = #tpu.dot_dimension_numbers<[1], [1], [0], [0], [0, 0, 1, 0], [], []>} : vector<3x40xf32>, vector<128x40xf32>, vector<3x128xf32> -> vector<3x128xf32>
    %c0_3 = arith.constant 0 : index
    %c0_4 = arith.constant 0 : index
    %3 = vector.load %arg3[%c0_3, %c0_4] : memref<3x1xf32, #tpu.memory_space<vmem>>, vector<3x1xf32>
    %4 = vector.broadcast %3 : vector<3x1xf32> to vector<3x128xf32>
    %5 = arith.addf %2, %4 : vector<3x128xf32>
    %6 = arith.mulf %5, %5 : vector<3x128xf32>
    %cst_5 = arith.constant dense<0.000000e+00> : vector<128xf32>
    %7 = vector.multi_reduction <add>, %6, %cst_5 [0] : vector<3x128xf32> to vector<128xf32>
    %8 = vector.shape_cast %7 : vector<128xf32> to vector<1x128xf32>
    %cst_6 = arith.constant 0.000000e+00 : f32
    %9 = vector.broadcast %cst_6 : f32 to vector<1x128xf32>
    %10 = arith.cmpf oeq, %8, %9 : vector<1x128xf32>
    %cst_7 = arith.constant 1.000000e+00 : f32
    %11 = vector.broadcast %cst_7 : f32 to vector<1x128xf32>
    %12 = arith.select %10, %11, %8 : vector<1x128xi1>, vector<1x128xf32>
    %13 = math.rsqrt %12 : vector<1x128xf32>
    %14 = vector.broadcast %13 : vector<1x128xf32> to vector<3x128xf32>
    %15 = arith.mulf %5, %14 : vector<3x128xf32>
    %cst_8 = arith.constant 0.000000e+00 : f32
    %16 = vector.shape_cast %10 : vector<1x128xi1> to vector<1x128xi1>
    %17 = vector.broadcast %16 : vector<1x128xi1> to vector<3x128xi1>
    %18 = vector.broadcast %cst_8 : f32 to vector<3x128xf32>
    %19 = arith.select %17, %18, %15 : vector<3x128xi1>, vector<3x128xf32>
    %c0_9 = arith.constant 0 : index
    %c0_10 = arith.constant 0 : index
    %20 = vector.load %arg4[%c0_9, %c0_10] : memref<3x128xf32, #tpu.memory_space<vmem>>, vector<3x128xf32>
    tpu.vector_store %arg4[%c0_9, %c0_10], %19 {strides = array<i32>} : memref<3x128xf32, #tpu.memory_space<vmem>>, vector<3x128xf32>,
    return
  }
  func.func @transform_0(%arg0: i32) -> (i32, i32) {
    %c0_i32 = arith.constant 0 : i32
    %c0_i32_0 = arith.constant 0 : i32
    return %arg0, %c0_i32 : i32, i32
  }
  func.func @transform_1(%arg0: i32) -> (i32, i32) {
    %c0_i32 = arith.constant 0 : i32
    %c0_i32_0 = arith.constant 0 : i32
    %c0_i32_1 = arith.constant 0 : i32
    return %c0_i32, %c0_i32_0 : i32, i32
  }
  func.func @transform_2(%arg0: i32) -> (i32, i32) {
    %c0_i32 = arith.constant 0 : i32
    %c0_i32_0 = arith.constant 0 : i32
    %c0_i32_1 = arith.constant 0 : i32
    return %c0_i32, %c0_i32_0 : i32, i32
  }
  func.func @transform_3(%arg0: i32) -> (i32, i32) {
    %c0_i32 = arith.constant 0 : i32
    %c0_i32_0 = arith.constant 0 : i32
    return %c0_i32, %arg0 : i32, i32
  }
}

</mosaic_0001>

<bundles_post_ra>
// kernel: tpu_custom_call.1
= control target key start
LH: loop header
LB: loop body
LE: loop exit
PB: predicated region body
PF: predicated region fallthrough
CT: control target
= control target key end

     0   :  { %8 = vsyncpa [#allocation3], 0  ;;  %s650_s0 = inlined_call_operand.vmem [shape: f32[256,40], index: 0, kind: input, shape index: {}]   ;;  %s651_s1 = inlined_call_operand.vmem [shape: f32[3,40], index: 1, kind: input, shape index: {}]   ;;  %s652_s2 = inlined_call_operand.vmem [shape: f32[3,1], index: 2, kind: input, shape index: {}]   ;;  %s653_s3 = inlined_call_operand.hbm [shape: f32[3,256], index: 3, kind: output, shape index: {}]  }
   0x1   :  { %10 = vsyncpa [#allocation3 + $0x1], 0  ;;  %s523_s12 = smov 0   ;;  %s525_s13 = smov 0  }
   0x2   :  { %s527_s14 = smov 0   ;;  %s529_s15 = smov 0  }
   0x3 LB: > { %s544_s16 = sadd.s32 4294967295, %s500_s15   ;;  %s367_s17 = sadd.s32 4294967294, %s500_s15   ;;  %s500_s15 = sphi %s529_s15, %s659_s15   ;;  %s496_s14 = sphi %s527_s14, %s658_s14   ;;  %s492_s13 = sphi %s525_s13, %s657_s13   ;;  %s488_s12 = sphi %s523_s12, %s656_s12  }
   0x4   : > { %s548_s18 = sadd.s32 1, %s500_s15   ;;  %s91_s19 = sadd.s32 1, %s496_s14 }
   0x5   : > { %s88_s20 = ssub.s32 %s500_s15, %s548_s18  ;;  %p101_p0 = scmp.ne.s32.totalorder %s496_s14, %s492_s13 }
   0x6   : > { %p89_p1 = scmp.eq.s32.totalorder %s88_s20, 0  ;;  %p102_p2 = scmp.eq.s32.totalorder %s544_s16, 1 }
   0x7   : > { %p107_p3 = scmp.ne.s32.totalorder %s492_s13, %s488_s12  ;;  %p108_p4 = scmp.eq.s32.totalorder %s367_s17, 1 }
   0x8   : > { %s559_s21 = scalar_select %p89_p1, %s496_s14, %s91_s19  }
   0x9   : > { %p561_p5 = por %p102_p2, %p101_p0  ;;  %p565_p6 = por %p108_p4, %p107_p3 }
   0xa   : > { %p370_p7 = scmp.ge.s32.totalorder %s500_s15, 1  ;;  %p141_p8 = scmp.lt.s32.totalorder %s500_s15, 3 }
   0xc   : > { %p142_p9 = pnand %p370_p7, %p141_p8 }
   0xd   : > { %s372_s24 = sshll.u32 (!%p142_p9), %s544_s16, 4  ;;  %s162_s6 = sand.u32 (!%p142_p9), 1, %s492_s13  }
   0xe   : > { %145 = sbr.rel (%p142_p9) target bundleno = 255 (0xff), region = 32  ;;  %p166_p10 = scmp.lt.s32.totalorder (!%p142_p9), %s372_s24, 31 }
   0xf   : > { %s371_s7 = sshll.u32 (!%p142_p9), %s162_s6, 2  ;;  %s392_s8 = sshll.u32 (!%p142_p9), %s544_s16, 2 }
  0x10   : > { %s303_s11 = scalar_lea.hbm (!%p142_p9), %s653_s3, %s392_s8  ;;  %s164_s17 = scalar_lea.vmem (!%p142_p9), [#allocation2], %s371_s7 }
  0x11   : > { %s305_s19 = sshll.u32 (!%p142_p9), %s164_s17, 4  ;;  %s307_s20 = sshll.u32 (!%p142_p9), %s303_s11, 4  ;;  %s306_s19 = int_to_ptr.vmem [resolvable:$true] %s305_s19  ;;  %s308_s20 = int_to_ptr.hbm [resolvable:$true] %s307_s20 }
  0x12   : > { %s293_s16 = scalar_lea.sflag (!%p142_p9), [#allocation3], %s162_s6 }
  0x13   : > { %s661_s24 = smov (!%p166_p10, %s372_s24), 31  ;;  %vm194_vm0 = vcmask 326656   ;;  %v188_v9 = vld [vmem:[%s652_s2] sm:$0x7]  ;;  %v502_v10 = vmov 0   ;;  %vm267_vm1 = vcmask 1042432  }
  0x14   : > { %s373_s25 = sshll.u32 %s661_s24, 3  ;;  %435 = vset.pattern.permute.xlu0 %v502_v10  ;;  %v187_v18 = vld [vmem:[%s651_s1] sm:$0x7]  ;;  %s452_s24 = sshra.s32 %s308_s20, 4  ;;  %s453_s24 = int_to_ptr.hbm [resolvable:$true] %s452_s24 }
  0x15   : > { %s575_s28 = scalar_lea.vmem %s650_s0, %s373_s25  ;;  %191 = vperm.xlu0 %435, %v188_v9   ;;  %s454_s25 = scalar_lea.hbm %s453_s24, 4 }
  0x16   : > { %v186_v0 = vld [vmem:[%s575_s28 + $0x78] sm:$0xff]  ;;  %v185_v1 = vld [vmem:[%s575_s28 + $0x70] sm:$0xff]  ;;  %v184_v2 = vld [vmem:[%s575_s28 + $0x68] sm:$0xff]  ;;  %p455_p11 = scmp.ne.s32.totalorder %s453_s24, %s454_s25  ;;  %p459_p0 = scmp.lt.s32.totalorder %s453_s24, %s653_s3 }
  0x17   : > { %374 = vmatpush.xpose.msk.msra.mxu0 %vm194_vm0, %v186_v0  ;;  %v183_v3 = vld [vmem:[%s575_s28 + $0x60] sm:$0xff]  ;;  %v182_v4 = vld [vmem:[%s575_s28 + $0x58] sm:$0xff]  ;;  %v181_v5 = vld [vmem:[%s575_s28 + $0x50] sm:$0xff] }
  0x18   : > { %v180_v6 = vld [vmem:[%s575_s28 + $0x48] sm:$0xff]  ;;  %v179_v7 = vld [vmem:[%s575_s28 + $0x40] sm:$0xff]  ;;  %v178_v8 = vld [vmem:[%s575_s28 + $0x38] sm:$0xff]  ;;  %p456_p12 = pnand %p455_p11, %p561_p5 }
  0x19   : > { %v177_v11 = vld [vmem:[%s575_s28 + $0x30] sm:$0xff]  ;;  %v176_v12 = vld [vmem:[%s575_s28 + $0x28] sm:$0xff]  ;;  %v175_v13 = vld [vmem:[%s575_s28 + $0x20] sm:$0xff] }
  0x1a   : > { %v174_v14 = vld [vmem:[%s575_s28 + $0x18] sm:$0xff]  ;;  %v173_v15 = vld [vmem:[%s575_s28 + $0x10] sm:$0xff]  ;;  %v172_v16 = vld [vmem:[%s575_s28 + $0x8] sm:$0xff]  ;;  %p457_p13 = pneg %p456_p12 }
  0x1b   : > { %375 = vmatpush.xpose.msk.msra.mxu0 %vm194_vm0, %v185_v1  ;;  %v171_v17 = vld [vmem:[%s575_s28] sm:$0xff]  ;;  %s458_s28 = scalar_lea.hbm %s653_s3, 8 }
  0x1c   : > { %p460_p1 = scmp.lt.s32.totalorder %s458_s28, %s454_s25 }
  0x1e   : > { %p461_p2 = por %p460_p1, %p459_p0 }
  0x1f   : > { %376 = vmatpush.xpose.msk.msra.mxu0 %vm194_vm0, %v184_v2 }
  0x20   : > { %p462_p3 = pnand %p461_p2, %p457_p13 }
  0x23   : > { %377 = vmatpush.xpose.msk.msra.mxu0 %vm194_vm0, %v183_v3 }
  0x27   : > { %378 = vmatpush.xpose.msk.msra.mxu0 %vm194_vm0, %v182_v4 }
  0x2b   : > { %379 = vmatpush.xpose.msk.msra.mxu0 %vm194_vm0, %v181_v5 }
  0x2f   : > { %380 = vmatpush.xpose.msk.msra.mxu0 %vm194_vm0, %v180_v6 }
  0x33   : > { %381 = vmatpush.xpose.msk.msra.mxu0 %vm194_vm0, %v179_v7 }
  0x37   : > { %382 = vmatpush.xpose.msk.msra.mxu0 %vm194_vm0, %v178_v8 }
  0x3b   : > { %383 = vmatpush.xpose.msk.msra.mxu0 %vm194_vm0, %v177_v11 }
  0x3f   : > { %384 = vmatpush.xpose.msk.msra.mxu0 %vm194_vm0, %v176_v12 }
  0x43   : > { %385 = vmatpush.xpose.msk.msra.mxu0 %vm194_vm0, %v175_v13 }
  0x47   : > { %386 = vmatpush.xpose.msk.msra.mxu0 %vm194_vm0, %v174_v14 }
  0x4b   : > { %387 = vmatpush.xpose.msk.msra.mxu0 %vm194_vm0, %v173_v15 }
  0x4f   : > { %388 = vmatpush.xpose.msk.msra.mxu0 %vm194_vm0, %v172_v16 }
  0x53   : > { %389 = vmatpush.xpose.msk.msra.mxu0 %vm194_vm0, %v171_v17 }
  0x56   : > { %390 = vmatmul.msk.f32.vlgmr.msra.gmra.mxu0 %vm194_vm0, %v187_v18 }
  0x87   : > { %v192_v19 = vpop.permute.xlu0 %191 }
  0xd3   : > { %v263_v20 = vpop.f32.mrf.mxu0 }
  0xd4   : > { %v264_v21 = vadd.f32 %v263_v20, %v192_v19 }
  0xd6   : > { %v266_v22 = vmul.f32 %v264_v21, %v264_v21 }
  0xd8   : > { %v268_v23 = vsel %vm267_vm1, %v266_v22, 0.0 }
  0xd9   : > { %v269_v24 = vrot.slane %v268_v23, 4 }
  0xdb   : > { %v270_v25 = vadd.f32 %v269_v24, %v268_v23 }
  0xdd   : > { %v271_v26 = vrot.slane %v270_v25, 2 }
  0xdf   : > { %v272_v27 = vadd.f32 %v271_v26, %v270_v25 }
  0xe1   : > { %v273_v28 = vrot.slane %v272_v27, 1 }
  0xe3   : > { %v274_v29 = vadd.f32 %v273_v28, %v272_v27 }
  0xe5   : > { %vm275_vm2 = vcmp.eq.f32.partialorder %v274_v29, 0.0 }
  0xe6   : > { %v276_v30 = vsel %vm275_vm2, 1.0, %v274_v29 }
  0xe7   : > { %436 = vrsqrt.f32 %v276_v30  ;;  %vm283_vm4 = vweird.f32 %v276_v30 }
  0xed   : > { %v437_v31 = vpop.eup %436 }
  0xee   : > { %v278_v32 = vmul.f32 %v437_v31, %v276_v30  ;;  %vm284_vm3 = vweird.f32 %v437_v31 }
  0xef   : > { %vm285_vm5 = vmor %vm283_vm4, %vm284_vm3 }
  0xf0   : > { %v279_v33 = vmul.f32 %v437_v31, %v278_v32 }
  0xf2   : > { %v280_v34 = vmul.f32 0.5, %v279_v33 }
  0xf4   : > { %v281_v35 = vsub.f32 1.5, %v280_v34 }
  0xf6   : > { %v282_v36 = vmul.f32 %v437_v31, %v281_v35 }
  0xf8   : > { %v286_v37 = vsel %vm285_vm5, %v437_v31, %v282_v36 }
  0xf9   : > { %v287_v38 = vmul.f32 %v286_v37, %v264_v21 }
  0xfb   : > { %v290_v39 = vsel %vm275_vm2, 0.0, %v287_v38 }
  0xfc   : > { %291 = vst [vmem:[%s164_s17] sm:$0x7] %v290_v39 }
  0xfd   : > { %465 = shalt.err (!%p462_p3)
}
  0xfe   : > { %395 = dma.vmem_to_hbm [thread:$0]  (%p561_p5), %s306_s19, 64, %s308_s20, %s293_s16  }
  0xff PF: > { %p401_p4 = scmp.ge.s32.totalorder %s500_s15, 2  ;;  %s319_s4 = sand.u32 1, %s488_s12  }
 0x100   : > { %s320_s5 = scalar_lea.sflag [#allocation3], %s319_s4 }
 0x101   : > { %p398_p7 = pnand %p401_p4, %p565_p6 }
 0x103   : > { %p399_p8 = pneg %p398_p7 }
 0x105   : > { %483 = dma.done.wait (%p399_p8), %s320_s5, 64  }
 0x106   : > { %485 = vsyncadd (%p399_p8), %s320_s5, 4294967232  ;;  %p13_p9 = scmp.ge.s32.totalorder %s548_s18, 4   ;;  %s656_s12 = smov %s492_s13 }
 0x107   : > { %s657_s13 = smov %s496_s14  ;;  %s658_s14 = smov %s559_s21 }
 0x108   : > { %s659_s15 = smov %s548_s18  ;;  %15 = sbr.rel (!%p13_p9) target bundleno = 3 (0x3), region = 67 }
 0x10d   :  { %326 = vsyncpa [#allocation3], 1 }
 0x10e   :  { %328 = vsyncpa [#allocation3 + $0x1], 1 }

</bundles_post_ra>
